<compile_context>
chip_gen: v7x
topology: tpu7x:2x2x1
jax: 0.10.0
libtpu: 0.0.40
codegen_flags: <defaults>
</compile_context>

<pallas_src>
import math

import jax
import jax.numpy as jnp
from jax.experimental import pallas as pl

# ------------------------- small synthetic configuration ---------------------
B = 2                        # batch
C = 3                        # channels (RGB, as DINOv2 expects)
H = W = 16                   # spatial
P = 4                        # patch size   (stand-in for DINOv2's 14)
L = (H // P) * (W // P)      # 16 patch tokens
DP = C * P * P               # 48 unfolded patch dim
D = 32                       # feat_dim_dino (stand-in for ViT-L's 1024)
D_STATE = 16                 # Mamba d_state
D_CONV = 4                   # Mamba d_conv
EXPAND = 2
D_INNER = EXPAND * D         # 64
DT_RANK = math.ceil(D / 16)  # 2
DROPRATE = 0.5
LANES = 128


def _align8(n):
    return ((n + 7) // 8) * 8


# ---------------- parameter-slab row layout (all blocks 8-row aligned) -------
R_WP    = 0                            # [DP, D]        patch-embed weight
R_POOL  = R_WP + _align8(DP)           # [B, B*L]       token-mean pooling
R_WINX  = R_POOL + _align8(B)          # [D, 2*D_INNER] [w_in_x_flip | w_in_x]
R_WINZ  = R_WINX + _align8(D)          # [D, D_INNER]   w_in_z
R_XPROJ = R_WINZ + _align8(D)          # [D_INNER, 96]  [w_xB | w_xC | w_dtx]
R_WOUT  = R_XPROJ + _align8(D_INNER)   # [D_INNER, D]   out_proj
R_WHEAD = R_WOUT + _align8(D_INNER)    # [D, 8]         [fc_xyz | fc_wpqr | pad]
R_AT    = R_WHEAD + _align8(D)         # [D_STATE, D_INNER]  A^T = (-exp(A_log))^T
R_BIAS  = R_AT + _align8(D_STATE)      # 8 rows of biases/gains (see below)
PARAM_ROWS = R_BIAS + 8                # 304

# bias row layout inside R_BIAS..R_BIAS+7
#  +0 bp[0:D]      +1 ln_g[0:D]     +2 ln_b[0:D]     +3 conv_b[0:D_INNER]
#  +4 conv tap2    +5 conv tap3     +6 b_dt          +7 d_skip[0:64], b_head[64:72]

# ---------------- data-slab row layout ----------------------------------------
R_PATCH = 0                            # [B*L, DP] unfolded patches
R_KEEP  = B * L                        # [B, D]    pre-scaled dropout keep mask
DATA_ROWS = _align8(R_KEEP + B)        # 40


# ------------------------------ in-kernel math --------------------------------
def _silu(x):
    # exact x * sigmoid(x) = x / (1 + exp(-x))
    return x / (1.0 + jnp.exp(-x))


def _softplus(x):
    safe = jnp.minimum(x, 20.0)
    return jnp.where(x > 20.0, x, jnp.log(1.0 + jnp.exp(safe)))


# ------------------------------ fused kernel ----------------------------------
def fused_kernel(data_ref, p_ref, out_ref):
    f32 = jnp.float32

    # ---- unpack parameter slab (static ref slices) ---------------------------
    wp      = p_ref[R_WP:R_WP + DP, 0:D]                                # [48,32]
    pool    = p_ref[R_POOL:R_POOL + B, 0:B * L]                         # [2,32]
    w_in_x2 = p_ref[R_WINX:R_WINX + D, 0:2 * D_INNER]                   # [32,128]
    w_in_z  = p_ref[R_WINZ:R_WINZ + D, 0:D_INNER]                       # [32,64]
    w_xproj = p_ref[R_XPROJ:R_XPROJ + D_INNER, 0:2 * D_STATE + D_INNER] # [64,96]
    w_out   = p_ref[R_WOUT:R_WOUT + D_INNER, 0:D]                       # [64,32]
    w_head  = p_ref[R_WHEAD:R_WHEAD + D, 0:8]                           # [32,8]
    a_t     = p_ref[R_AT:R_AT + D_STATE, 0:D_INNER]                     # [16,64]

    bp      = p_ref[R_BIAS + 0:R_BIAS + 1, 0:D]
    ln_g    = p_ref[R_BIAS + 1:R_BIAS + 2, 0:D]
    ln_b    = p_ref[R_BIAS + 2:R_BIAS + 3, 0:D]
    conv_b  = p_ref[R_BIAS + 3:R_BIAS + 4, 0:D_INNER]
    w2      = p_ref[R_BIAS + 4:R_BIAS + 5, 0:D_INNER]
    w3      = p_ref[R_BIAS + 5:R_BIAS + 6, 0:D_INNER]
    b_dt    = p_ref[R_BIAS + 6:R_BIAS + 7, 0:D_INNER]
    d_skip  = p_ref[R_BIAS + 7:R_BIAS + 8, 0:D_INNER]
    b_head  = p_ref[R_BIAS + 7:R_BIAS + 8, D_INNER:D_INNER + 8]

    # ---- 1) synthetic DINOv2: patch-embed + LayerNorm ------------------------
    patches = data_ref[R_PATCH:R_PATCH + B * L, 0:DP]                   # [32,48]
    tok = jnp.dot(patches, wp, preferred_element_type=f32) + bp         # [32,32]
    mu = jnp.mean(tok, axis=-1, keepdims=True)
    var = jnp.mean((tok - mu) ** 2, axis=-1, keepdims=True)
    xn = (tok - mu) * jax.lax.rsqrt(var + 1e-6) * ln_g + ln_b

    # ---- 2) x.mean(dim=1): token-mean pooling as one matmul ------------------
    x_mean = jnp.dot(pool, xn, preferred_element_type=f32)              # [B,32]

    # ---- 3) in_proj for both timesteps (flip folded into weight rows) --------
    # columns 0:64   -> x0 = flip(x_mean) @ w_in_x
    # columns 64:128 -> x1 = x_mean       @ w_in_x
    x01 = jnp.dot(x_mean, w_in_x2, preferred_element_type=f32)          # [B,128]
    z1 = jnp.dot(x_mean, w_in_z, preferred_element_type=f32)            # [B,64]
    x0 = x01[:, 0:D_INNER]
    x1 = x01[:, D_INNER:2 * D_INNER]

    # ---- 4) causal depthwise conv1d (k=4, left pad 3, seq len 2) + SiLU ------
    # only taps 2,3 ever touch data -> 3 full-tile FMAs
    xc0 = _silu(conv_b + w3 * x0)
    xc1 = _silu(conv_b + w2 * x0 + w3 * x1)
    xc = jnp.concatenate([xc0, xc1], axis=0)                            # [2B,64]

    # ---- 5) x_proj (+ folded dt_proj) for both timesteps in ONE matmul -------
    proj = jnp.dot(xc, w_xproj, preferred_element_type=f32)             # [2B,96]
    dlt = _softplus(proj[:, 2 * D_STATE:2 * D_STATE + D_INNER] + b_dt)  # [2B,64]
    B0 = proj[0:B, 0:D_STATE]
    B1 = proj[B:2 * B, 0:D_STATE]
    C1 = proj[B:2 * B, D_STATE:2 * D_STATE]
    d0 = dlt[0:B, :]
    d1 = dlt[B:2 * B, :]

    # ---- 6) selective scan, len 2, h(−1)=0, only y(1) consumed ----------------
    # y1 = d0*xc0 * sum_s (C1*B0)[s] * exp(d1 * A^T[s,:])  +  (C1.B1) * d1*xc1
    cb1 = jnp.sum(C1 * B1, axis=-1, keepdims=True)                      # [B,1]
    term2 = cb1 * d1 * xc1                                              # [B,64]
    w0 = C1 * B0                                                        # [B,16]
    rows = []
    for b in range(B):                                                  # B=2, static
        e_b = jnp.exp(d1[b:b + 1, :] * a_t)                             # [16,64]
        rows.append(jnp.dot(w0[b:b + 1, :], e_b, preferred_element_type=f32))
    term1 = d0 * xc0 * jnp.concatenate(rows, axis=0)                    # [B,64]
    y = term1 + term2
    y = (y + xc1 * d_skip) * _silu(z1)                                  # D-skip + gate
    feat = jnp.dot(y, w_out, preferred_element_type=f32)                # [B,32]

    # ---- 7) dropout: pre-scaled keep mask from the data slab -----------------
    keep = data_ref[R_KEEP:R_KEEP + B, 0:D]                             # [B,32]
    feat = feat * keep

    # ---- 8) heads: one matmul against pre-concatenated [D, 8] weight ---------
    out_ref[...] = jnp.dot(feat, w_head, preferred_element_type=f32) + b_head


# ---------------------------------- wrapper ------------------------------------
def atloc_fused_call(data, param_slab):
    return pl.pallas_call(
        fused_kernel,
        out_shape=jax.ShapeDtypeStruct((B, 8), jnp.float32),
        grid=(1,),
        in_specs=[pl.BlockSpec((DATA_ROWS, LANES), lambda i: (0, 0)),
                  pl.BlockSpec((PARAM_ROWS, LANES), lambda i: (0, 0))],
        out_specs=pl.BlockSpec((B, 8), lambda i: (0, 0)),
    )(data, param_slab)


def extract_patches(x):
    # x: [B, C, H, W] -> [B*L, C*P*P], flattened in (C, P, P) order
    xb = x.reshape(B, C, H // P, P, W // P, P)
    xb = xb.transpose(0, 2, 4, 1, 3, 5)
    return xb.reshape(B * L, DP)


def init_params(key):
    ks = jax.random.split(key, 9)

    def kaiming(k, shape):  # kaiming_normal_ on [in, out] layout (fan_in = shape[0])
        return (jax.random.normal(k, shape) * jnp.sqrt(2.0 / shape[0])).astype(jnp.float32)

    p = {}
    # synthetic DINOv2: patch embed + final LayerNorm
    p["wp"] = kaiming(ks[0], (DP, D))
    p["bp"] = jnp.zeros((1, D), jnp.float32)
    p["ln_g"] = jnp.ones((1, D), jnp.float32)
    p["ln_b"] = jnp.zeros((1, D), jnp.float32)
    # Mamba(d_model=D, d_state=16, d_conv=4, expand=2)
    p["w_in"] = kaiming(ks[1], (D, 2 * D_INNER))
    p["conv_w"] = (jax.random.normal(ks[2], (D_CONV, D_INNER)) * 0.2).astype(jnp.float32)
    p["conv_b"] = jnp.zeros((1, D_INNER), jnp.float32)
    p["w_x"] = kaiming(ks[3], (D_INNER, DT_RANK + 2 * D_STATE))
    p["w_dt"] = kaiming(ks[4], (DT_RANK, D_INNER))
    p["b_dt"] = jax.random.uniform(ks[5], (1, D_INNER),
                                   minval=-4.0, maxval=-2.0).astype(jnp.float32)
    p["a_log"] = jnp.log(jnp.tile(jnp.arange(1, D_STATE + 1, dtype=jnp.float32)[None, :],
                                  (D_INNER, 1)))
    p["d"] = jnp.ones((1, D_INNER), jnp.float32)
    p["w_out"] = kaiming(ks[6], (D_INNER, D))
    # heads: kaiming_normal_ weights, zero biases (per module __init__)
    p["w_xyz"] = kaiming(ks[7], (D, 3))
    p["b_xyz"] = jnp.zeros((1, 3), jnp.float32)
    p["w_wpqr"] = kaiming(ks[8], (D, 4))
    p["b_wpqr"] = jnp.zeros((1, 4), jnp.float32)
    return p


def prepare_fused_params(p):
    """Pure layout plumbing: pack all weights/biases into one [304, 128] slab."""
    slab = jnp.zeros((PARAM_ROWS, LANES), jnp.float32)

    def put(s, row, w):
        return s.at[row:row + w.shape[0], 0:w.shape[1]].set(w)

    slab = put(slab, R_WP, p["wp"])
    # token-mean pooling as a matmul
    pool = jnp.repeat(jnp.eye(B, dtype=jnp.float32), L, axis=1) / float(L)
    slab = put(slab, R_POOL, pool)
    # in_proj split; feature flip folded into the t=0 weight (flip(x)@W == x@W[::-1])
    w_in_x = p["w_in"][:, :D_INNER]
    w_in_z = p["w_in"][:, D_INNER:]
    slab = put(slab, R_WINX, jnp.concatenate([w_in_x[::-1, :], w_in_x], axis=1))
    slab = put(slab, R_WINZ, w_in_z)
    # x_proj split; dt_proj weight folded into the dt slice (exact reassociation)
    w_x_dt = p["w_x"][:, :DT_RANK]
    w_xB = p["w_x"][:, DT_RANK:DT_RANK + D_STATE]
    w_xC = p["w_x"][:, DT_RANK + D_STATE:]
    w_dtx = w_x_dt @ p["w_dt"]                                        # [64,64]
    slab = put(slab, R_XPROJ, jnp.concatenate([w_xB, w_xC, w_dtx], axis=1))
    slab = put(slab, R_WOUT, p["w_out"])
    # heads: one concatenated weight, lane-padded to 8 columns
    w_head = jnp.concatenate([p["w_xyz"], p["w_wpqr"]], axis=1)       # [D,7]
    slab = put(slab, R_WHEAD, jnp.pad(w_head, ((0, 0), (0, 1))))
    # A = -exp(A_log), stored transposed so D_INNER sits on lanes in the scan
    slab = put(slab, R_AT, (-jnp.exp(p["a_log"])).T)
    # bias / gain rows
    slab = slab.at[R_BIAS + 0, 0:D].set(p["bp"][0])
    slab = slab.at[R_BIAS + 1, 0:D].set(p["ln_g"][0])
    slab = slab.at[R_BIAS + 2, 0:D].set(p["ln_b"][0])
    slab = slab.at[R_BIAS + 3, 0:D_INNER].set(p["conv_b"][0])
    slab = slab.at[R_BIAS + 4, 0:D_INNER].set(p["conv_w"][2])         # conv tap 2
    slab = slab.at[R_BIAS + 5, 0:D_INNER].set(p["conv_w"][3])         # conv tap 3
    slab = slab.at[R_BIAS + 6, 0:D_INNER].set(p["b_dt"][0])
    slab = slab.at[R_BIAS + 7, 0:D_INNER].set(p["d"][0])
    b_head = jnp.concatenate([p["b_xyz"], p["b_wpqr"]], axis=1)[0]    # [7]
    slab = slab.at[R_BIAS + 7, D_INNER:D_INNER + 7].set(b_head)
    return slab


def atloc_dinov2_mamba_forward(x, param_slab, dropout_key):
    patches = extract_patches(x)                                      # [B*L, DP]
    # F.dropout(p=0.5, training=True) semantics: Bernoulli keep, scaled 1/(1-p)
    keep = (jax.random.bernoulli(dropout_key, 1.0 - DROPRATE, (B, D))
            .astype(jnp.float32) * (1.0 / (1.0 - DROPRATE)))
    data = jnp.zeros((DATA_ROWS, LANES), jnp.float32)
    data = data.at[R_PATCH:R_PATCH + B * L, 0:DP].set(patches)
    data = data.at[R_KEEP:R_KEEP + B, 0:D].set(keep)
    out8 = atloc_fused_call(data, param_slab)                          # [B, 8]
    return out8[:, :7]                                                 # cat(xyz, wpqr)


if __name__ == "__main__":
    key = jax.random.PRNGKey(0)
    k_params, k_x, k_drop = jax.random.split(key, 3)
    params = init_params(k_params)
    param_slab = prepare_fused_params(params)
    x = jax.random.normal(k_x, (B, C, H, W), jnp.float32)

    fwd = jax.jit(atloc_dinov2_mamba_forward)
    out = jax.block_until_ready(fwd(x, param_slab, k_drop))

    assert out.shape == (B, 7), out.shape
    assert bool(jnp.all(jnp.isfinite(out)))
    print("KERNEL_OK")
</pallas_src>

<mosaic_0001>
module attributes {stable_mosaic.version = 11 : i64} {
  func.func @fused_kernel(%arg0: i32, %arg1: memref<40x128xf32, #tpu.memory_space<vmem>>, %arg2: memref<304x128xf32, #tpu.memory_space<vmem>>, %arg3: memref<2x8xf32, #tpu.memory_space<vmem>>) attributes {dimension_semantics = [#tpu.dimension_semantics<arbitrary>], iteration_bounds = array<i64: 1>, scalar_prefetch = 0 : i64, scratch_operands = 0 : i64, tpu.core_type = #tpu.core_type<tc>, window_params = [{pipeline_mode = #tpu.pipeline_mode<synchronous>, transform_indices = @transform_0, window_bounds = array<i64: 40, 128>}, {pipeline_mode = #tpu.pipeline_mode<synchronous>, transform_indices = @transform_1, window_bounds = array<i64: 304, 128>}, {pipeline_mode = #tpu.pipeline_mode<synchronous>, transform_indices = @transform_2, window_bounds = array<i64: 2, 8>}]} {
    %c0 = arith.constant 0 : index
    %c0_0 = arith.constant 0 : index
    %0 = vector.load %arg2[%c0, %c0_0] : memref<304x128xf32, #tpu.memory_space<vmem>>, vector<48x32xf32>
    %c48 = arith.constant 48 : index
    %c0_1 = arith.constant 0 : index
    %1 = vector.load %arg2[%c48, %c0_1] : memref<304x128xf32, #tpu.memory_space<vmem>>, vector<2x32xf32>
    %c56 = arith.constant 56 : index
    %c0_2 = arith.constant 0 : index
    %2 = vector.load %arg2[%c56, %c0_2] : memref<304x128xf32, #tpu.memory_space<vmem>>, vector<32x128xf32>
    %c88 = arith.constant 88 : index
    %c0_3 = arith.constant 0 : index
    %3 = vector.load %arg2[%c88, %c0_3] : memref<304x128xf32, #tpu.memory_space<vmem>>, vector<32x64xf32>
    %c120 = arith.constant 120 : index
    %c0_4 = arith.constant 0 : index
    %4 = vector.load %arg2[%c120, %c0_4] : memref<304x128xf32, #tpu.memory_space<vmem>>, vector<64x96xf32>
    %c184 = arith.constant 184 : index
    %c0_5 = arith.constant 0 : index
    %5 = vector.load %arg2[%c184, %c0_5] : memref<304x128xf32, #tpu.memory_space<vmem>>, vector<64x32xf32>
    %c248 = arith.constant 248 : index
    %c0_6 = arith.constant 0 : index
    %6 = vector.load %arg2[%c248, %c0_6] : memref<304x128xf32, #tpu.memory_space<vmem>>, vector<32x8xf32>
    %c280 = arith.constant 280 : index
    %c0_7 = arith.constant 0 : index
    %7 = vector.load %arg2[%c280, %c0_7] : memref<304x128xf32, #tpu.memory_space<vmem>>, vector<16x64xf32>
    %c296 = arith.constant 296 : index
    %c0_8 = arith.constant 0 : index
    %8 = vector.load %arg2[%c296, %c0_8] : memref<304x128xf32, #tpu.memory_space<vmem>>, vector<1x32xf32>
    %c297 = arith.constant 297 : index
    %c0_9 = arith.constant 0 : index
    %9 = vector.load %arg2[%c297, %c0_9] : memref<304x128xf32, #tpu.memory_space<vmem>>, vector<1x32xf32>
    %c298 = arith.constant 298 : index
    %c0_10 = arith.constant 0 : index
    %10 = vector.load %arg2[%c298, %c0_10] : memref<304x128xf32, #tpu.memory_space<vmem>>, vector<1x32xf32>
    %c299 = arith.constant 299 : index
    %c0_11 = arith.constant 0 : index
    %11 = vector.load %arg2[%c299, %c0_11] : memref<304x128xf32, #tpu.memory_space<vmem>>, vector<1x64xf32>
    %c300 = arith.constant 300 : index
    %c0_12 = arith.constant 0 : index
    %12 = vector.load %arg2[%c300, %c0_12] : memref<304x128xf32, #tpu.memory_space<vmem>>, vector<1x64xf32>
    %c301 = arith.constant 301 : index
    %c0_13 = arith.constant 0 : index
    %13 = vector.load %arg2[%c301, %c0_13] : memref<304x128xf32, #tpu.memory_space<vmem>>, vector<1x64xf32>
    %c302 = arith.constant 302 : index
    %c0_14 = arith.constant 0 : index
    %14 = vector.load %arg2[%c302, %c0_14] : memref<304x128xf32, #tpu.memory_space<vmem>>, vector<1x64xf32>
    %c303 = arith.constant 303 : index
    %c0_15 = arith.constant 0 : index
    %15 = vector.load %arg2[%c303, %c0_15] : memref<304x128xf32, #tpu.memory_space<vmem>>, vector<1x64xf32>
    %c303_16 = arith.constant 303 : index
    %c64 = arith.constant 64 : index
    %16 = vector.load %arg2[%c303_16, %c64] : memref<304x128xf32, #tpu.memory_space<vmem>>, vector<1x8xf32>
    %c0_17 = arith.constant 0 : index
    %c0_18 = arith.constant 0 : index
    %17 = vector.load %arg1[%c0_17, %c0_18] : memref<40x128xf32, #tpu.memory_space<vmem>>, vector<32x48xf32>
    %cst = arith.constant dense<0.000000e+00> : vector<32x32xf32>
    %18 = tpu.matmul %17, %0, %cst {dimension_numbers = #tpu.dot_dimension_numbers<[1], [0], [0], [1], [0, 0, 1, 1], [], []>} : vector<32x48xf32>, vector<48x32xf32>, vector<32x32xf32> -> vector<32x32xf32>
    %19 = vector.broadcast %8 : vector<1x32xf32> to vector<32x32xf32>
    %20 = arith.addf %18, %19 : vector<32x32xf32>
    %cst_19 = arith.constant dense<0.000000e+00> : vector<32xf32>
    %21 = vector.multi_reduction <add>, %20, %cst_19 [1] : vector<32x32xf32> to vector<32xf32>
    %22 = vector.shape_cast %21 : vector<32xf32> to vector<32x1xf32>
    %cst_20 = arith.constant 3.200000e+01 : f32
    %23 = vector.broadcast %cst_20 : f32 to vector<32x1xf32>
    %24 = arith.divf %22, %23 : vector<32x1xf32>
    %25 = vector.broadcast %24 : vector<32x1xf32> to vector<32x32xf32>
    %26 = arith.subf %20, %25 : vector<32x32xf32>
    %27 = arith.mulf %26, %26 : vector<32x32xf32>
    %cst_21 = arith.constant dense<0.000000e+00> : vector<32xf32>
    %28 = vector.multi_reduction <add>, %27, %cst_21 [1] : vector<32x32xf32> to vector<32xf32>
    %29 = vector.shape_cast %28 : vector<32xf32> to vector<32x1xf32>
    %cst_22 = arith.constant 3.200000e+01 : f32
    %30 = vector.broadcast %cst_22 : f32 to vector<32x1xf32>
    %31 = arith.divf %29, %30 : vector<32x1xf32>
    %32 = vector.broadcast %24 : vector<32x1xf32> to vector<32x32xf32>
    %33 = arith.subf %20, %32 : vector<32x32xf32>
    %cst_23 = arith.constant 9.99999997E-7 : f32
    %34 = vector.broadcast %cst_23 : f32 to vector<32x1xf32>
    %35 = arith.addf %31, %34 : vector<32x1xf32>
    %36 = math.rsqrt %35 : vector<32x1xf32>
    %37 = vector.broadcast %36 : vector<32x1xf32> to vector<32x32xf32>
    %38 = arith.mulf %33, %37 : vector<32x32xf32>
    %39 = vector.broadcast %9 : vector<1x32xf32> to vector<32x32xf32>
    %40 = arith.mulf %38, %39 : vector<32x32xf32>
    %41 = vector.broadcast %10 : vector<1x32xf32> to vector<32x32xf32>
    %42 = arith.addf %40, %41 : vector<32x32xf32>
    %cst_24 = arith.constant dense<0.000000e+00> : vector<2x32xf32>
    %43 = tpu.matmul %1, %42, %cst_24 {dimension_numbers = #tpu.dot_dimension_numbers<[1], [0], [0], [1], [0, 0, 1, 1], [], []>} : vector<2x32xf32>, vector<32x32xf32>, vector<2x32xf32> -> vector<2x32xf32>
    %cst_25 = arith.constant dense<0.000000e+00> : vector<2x128xf32>
    %44 = tpu.matmul %43, %2, %cst_25 {dimension_numbers = #tpu.dot_dimension_numbers<[1], [0], [0], [1], [0, 0, 1, 1], [], []>} : vector<2x32xf32>, vector<32x128xf32>, vector<2x128xf32> -> vector<2x128xf32>
    %cst_26 = arith.constant dense<0.000000e+00> : vector<2x64xf32>
    %45 = tpu.matmul %43, %3, %cst_26 {dimension_numbers = #tpu.dot_dimension_numbers<[1], [0], [0], [1], [0, 0, 1, 1], [], []>} : vector<2x32xf32>, vector<32x64xf32>, vector<2x64xf32> -> vector<2x64xf32>
    %46 = vector.extract_strided_slice %44 {offsets = [0, 0], sizes = [2, 64], strides = [1, 1]} : vector<2x128xf32> to vector<2x64xf32>
    %47 = vector.extract_strided_slice %44 {offsets = [0, 64], sizes = [2, 64], strides = [1, 1]} : vector<2x128xf32> to vector<2x64xf32>
    %48 = vector.broadcast %13 : vector<1x64xf32> to vector<2x64xf32>
    %49 = arith.mulf %48, %46 : vector<2x64xf32>
    %50 = vector.broadcast %11 : vector<1x64xf32> to vector<2x64xf32>
    %51 = arith.addf %50, %49 : vector<2x64xf32>
    %cst_27 = arith.constant 0.000000e+00 : f32
    %52 = vector.broadcast %cst_27 : f32 to vector<2x64xf32>
    %53 = arith.subf %52, %51 : vector<2x64xf32>
    %54 = math.exp %53 : vector<2x64xf32>
    %cst_28 = arith.constant 1.000000e+00 : f32
    %55 = vector.broadcast %cst_28 : f32 to vector<2x64xf32>
    %56 = arith.addf %55, %54 : vector<2x64xf32>
    %57 = arith.divf %51, %56 : vector<2x64xf32>
    %58 = vector.broadcast %12 : vector<1x64xf32> to vector<2x64xf32>
    %59 = arith.mulf %58, %46 : vector<2x64xf32>
    %60 = vector.broadcast %11 : vector<1x64xf32> to vector<2x64xf32>
    %61 = arith.addf %60, %59 : vector<2x64xf32>
    %62 = vector.broadcast %13 : vector<1x64xf32> to vector<2x64xf32>
    %63 = arith.mulf %62, %47 : vector<2x64xf32>
    %64 = arith.addf %61, %63 : vector<2x64xf32>
    %cst_29 = arith.constant 0.000000e+00 : f32
    %65 = vector.broadcast %cst_29 : f32 to vector<2x64xf32>
    %66 = arith.subf %65, %64 : vector<2x64xf32>
    %67 = math.exp %66 : vector<2x64xf32>
    %cst_30 = arith.constant 1.000000e+00 : f32
    %68 = vector.broadcast %cst_30 : f32 to vector<2x64xf32>
    %69 = arith.addf %68, %67 : vector<2x64xf32>
    %70 = arith.divf %64, %69 : vector<2x64xf32>
    %71 = tpu.concatenate %57, %70 in 0 : vector<2x64xf32>, vector<2x64xf32> -> vector<4x64xf32>
    %cst_31 = arith.constant dense<0.000000e+00> : vector<4x96xf32>
    %72 = tpu.matmul %71, %4, %cst_31 {dimension_numbers = #tpu.dot_dimension_numbers<[1], [0], [0], [1], [0, 0, 1, 1], [], []>} : vector<4x64xf32>, vector<64x96xf32>, vector<4x96xf32> -> vector<4x96xf32>
    %73 = vector.extract_strided_slice %72 {offsets = [0, 32], sizes = [4, 64], strides = [1, 1]} : vector<4x96xf32> to vector<4x64xf32>
    %74 = vector.broadcast %14 : vector<1x64xf32> to vector<4x64xf32>
    %75 = arith.addf %73, %74 : vector<4x64xf32>
    %cst_32 = arith.constant 2.000000e+01 : f32
    %76 = vector.broadcast %cst_32 : f32 to vector<4x64xf32>
    %77 = arith.minimumf %75, %76 : vector<4x64xf32>
    %cst_33 = arith.constant 2.000000e+01 : f32
    %78 = vector.broadcast %cst_33 : f32 to vector<4x64xf32>
    %79 = arith.cmpf ogt, %75, %78 : vector<4x64xf32>
    %80 = math.exp %77 : vector<4x64xf32>
    %cst_34 = arith.constant 1.000000e+00 : f32
    %81 = vector.broadcast %cst_34 : f32 to vector<4x64xf32>
    %82 = arith.addf %81, %80 : vector<4x64xf32>
    %83 = math.log %82 : vector<4x64xf32>
    %84 = arith.select %79, %75, %83 : vector<4x64xi1>, vector<4x64xf32>
    %85 = vector.extract_strided_slice %72 {offsets = [0, 0], sizes = [2, 16], strides = [1, 1]} : vector<4x96xf32> to vector<2x16xf32>
    %86 = vector.extract_strided_slice %72 {offsets = [2, 0], sizes = [2, 16], strides = [1, 1]} : vector<4x96xf32> to vector<2x16xf32>
    %87 = vector.extract_strided_slice %72 {offsets = [2, 16], sizes = [2, 16], strides = [1, 1]} : vector<4x96xf32> to vector<2x16xf32>
    %88 = vector.extract_strided_slice %84 {offsets = [0, 0], sizes = [2, 64], strides = [1, 1]} : vector<4x64xf32> to vector<2x64xf32>
    %89 = vector.extract_strided_slice %84 {offsets = [2, 0], sizes = [2, 64], strides = [1, 1]} : vector<4x64xf32> to vector<2x64xf32>
    %90 = arith.mulf %87, %86 : vector<2x16xf32>
    %cst_35 = arith.constant dense<0.000000e+00> : vector<2xf32>
    %91 = vector.multi_reduction <add>, %90, %cst_35 [1] : vector<2x16xf32> to vector<2xf32>
    %92 = vector.shape_cast %91 : vector<2xf32> to vector<2x1xf32>
    %93 = vector.broadcast %92 : vector<2x1xf32> to vector<2x64xf32>
    %94 = arith.mulf %93, %89 : vector<2x64xf32>
    %95 = arith.mulf %94, %70 : vector<2x64xf32>
    %96 = arith.mulf %87, %85 : vector<2x16xf32>
    %97 = vector.extract_strided_slice %89 {offsets = [0, 0], sizes = [1, 64], strides = [1, 1]} : vector<2x64xf32> to vector<1x64xf32>
    %98 = vector.broadcast %97 : vector<1x64xf32> to vector<16x64xf32>
    %99 = arith.mulf %98, %7 : vector<16x64xf32>
    %100 = math.exp %99 : vector<16x64xf32>
    %101 = vector.extract_strided_slice %96 {offsets = [0, 0], sizes = [1, 16], strides = [1, 1]} : vector<2x16xf32> to vector<1x16xf32>
    %cst_36 = arith.constant dense<0.000000e+00> : vector<1x64xf32>
    %102 = tpu.matmul %101, %100, %cst_36 {dimension_numbers = #tpu.dot_dimension_numbers<[1], [0], [0], [1], [0, 0, 1, 1], [], []>} : vector<1x16xf32>, vector<16x64xf32>, vector<1x64xf32> -> vector<1x64xf32>
    %103 = vector.extract_strided_slice %89 {offsets = [1, 0], sizes = [1, 64], strides = [1, 1]} : vector<2x64xf32> to vector<1x64xf32>
    %104 = vector.broadcast %103 : vector<1x64xf32> to vector<16x64xf32>
    %105 = arith.mulf %104, %7 : vector<16x64xf32>
    %106 = math.exp %105 : vector<16x64xf32>
    %107 = vector.extract_strided_slice %96 {offsets = [1, 0], sizes = [1, 16], strides = [1, 1]} : vector<2x16xf32> to vector<1x16xf32>
    %cst_37 = arith.constant dense<0.000000e+00> : vector<1x64xf32>
    %108 = tpu.matmul %107, %106, %cst_37 {dimension_numbers = #tpu.dot_dimension_numbers<[1], [0], [0], [1], [0, 0, 1, 1], [], []>} : vector<1x16xf32>, vector<16x64xf32>, vector<1x64xf32> -> vector<1x64xf32>
    %109 = arith.mulf %88, %57 : vector<2x64xf32>
    %110 = tpu.concatenate %102, %108 in 0 : vector<1x64xf32>, vector<1x64xf32> -> vector<2x64xf32>
    %111 = arith.mulf %109, %110 : vector<2x64xf32>
    %112 = arith.addf %111, %95 : vector<2x64xf32>
    %113 = vector.broadcast %15 : vector<1x64xf32> to vector<2x64xf32>
    %114 = arith.mulf %70, %113 : vector<2x64xf32>
    %115 = arith.addf %112, %114 : vector<2x64xf32>
    %cst_38 = arith.constant 0.000000e+00 : f32
    %116 = vector.broadcast %cst_38 : f32 to vector<2x64xf32>
    %117 = arith.subf %116, %45 : vector<2x64xf32>
    %118 = math.exp %117 : vector<2x64xf32>
    %cst_39 = arith.constant 1.000000e+00 : f32
    %119 = vector.broadcast %cst_39 : f32 to vector<2x64xf32>
    %120 = arith.addf %119, %118 : vector<2x64xf32>
    %121 = arith.divf %45, %120 : vector<2x64xf32>
    %122 = arith.mulf %115, %121 : vector<2x64xf32>
    %cst_40 = arith.constant dense<0.000000e+00> : vector<2x32xf32>
    %123 = tpu.matmul %122, %5, %cst_40 {dimension_numbers = #tpu.dot_dimension_numbers<[1], [0], [0], [1], [0, 0, 1, 1], [], []>} : vector<2x64xf32>, vector<64x32xf32>, vector<2x32xf32> -> vector<2x32xf32>
    %c32 = arith.constant 32 : index
    %c0_41 = arith.constant 0 : index
    %124 = vector.load %arg1[%c32, %c0_41] : memref<40x128xf32, #tpu.memory_space<vmem>>, vector<2x32xf32>
    %125 = arith.mulf %123, %124 : vector<2x32xf32>
    %cst_42 = arith.constant dense<0.000000e+00> : vector<2x8xf32>
    %126 = tpu.matmul %125, %6, %cst_42 {dimension_numbers = #tpu.dot_dimension_numbers<[1], [0], [0], [1], [0, 0, 1, 1], [], []>} : vector<2x32xf32>, vector<32x8xf32>, vector<2x8xf32> -> vector<2x8xf32>
    %127 = vector.broadcast %16 : vector<1x8xf32> to vector<2x8xf32>
    %128 = arith.addf %126, %127 : vector<2x8xf32>
    %c0_43 = arith.constant 0 : index
    %c0_44 = arith.constant 0 : index
    %129 = vector.load %arg3[%c0_43, %c0_44] : memref<2x8xf32, #tpu.memory_space<vmem>>, vector<2x8xf32>
    tpu.vector_store %arg3[%c0_43, %c0_44], %128 {strides = array<i32>} : memref<2x8xf32, #tpu.memory_space<vmem>>, vector<2x8xf32>,
    return
  }
  func.func @transform_0(%arg0: i32) -> (i32, i32) {
    %c0_i32 = arith.constant 0 : i32
    %c0_i32_0 = arith.constant 0 : i32
    %c0_i32_1 = arith.constant 0 : i32
    return %c0_i32, %c0_i32_0 : i32, i32
  }
  func.func @transform_1(%arg0: i32) -> (i32, i32) {
    %c0_i32 = arith.constant 0 : i32
    %c0_i32_0 = arith.constant 0 : i32
    %c0_i32_1 = arith.constant 0 : i32
    return %c0_i32, %c0_i32_0 : i32, i32
  }
  func.func @transform_2(%arg0: i32) -> (i32, i32) {
    %c0_i32 = arith.constant 0 : i32
    %c0_i32_0 = arith.constant 0 : i32
    %c0_i32_1 = arith.constant 0 : i32
    return %c0_i32, %c0_i32_0 : i32, i32
  }
}

</mosaic_0001>

<bundles_post_ra>
// kernel: atloc_dinov2_mamba_forward.1
= control target key start
LH: loop header
LB: loop body
LE: loop exit
PB: predicated region body
PF: predicated region fallthrough
CT: control target
= control target key end

     0   :  { %vm65_vm0 = vcmask 392192   ;;  %s1619_s0 = inlined_call_operand.vmem [shape: f32[40,128], index: 0, kind: input, shape index: {}]   ;;  %s1620_s1 = inlined_call_operand.vmem [shape: f32[304,128], index: 1, kind: input, shape index: {}]   ;;  %s1621_s2 = inlined_call_operand.hbm [shape: f32[2,8], index: 2, kind: output, shape index: {}]  }
   0x1   :  { %v12_v0 = vld [vmem:[%s1620_s1] sm:$0xff]  ;;  %v13_v1 = vld [vmem:[%s1620_s1 + $0x8] sm:$0xff]  ;;  %v14_v2 = vld [vmem:[%s1620_s1 + $0x10] sm:$0xff] }
   0x2   :  { %v1196_v3 = vpack.c.bf16 %v13_v1, %v12_v0  ;;  %v15_v4 = vld [vmem:[%s1620_s1 + $0x18] sm:$0xff]  ;;  %v16_v6 = vld [vmem:[%s1620_s1 + $0x20] sm:$0xff]  ;;  %v17_v7 = vld [vmem:[%s1620_s1 + $0x28] sm:$0xff] }
   0x3   :  { %v1200_v5 = vpack.c.bf16 %v15_v4, %v14_v2  ;;  %v57_v8 = vld [vmem:[%s1619_s0] sm:$0xff] }
   0x4   :  { %1197 = vmatprep.subr.bf16.mxu0 %v1196_v3  ;;  %1094 = vmatprep.mubr.msk.f32.mxu0 %vm65_vm0, %v57_v8 }
   0x5   :  { %7 = vsyncpa [#allocation3], 0  ;;  %1199 = vmatpush3.bf16.msra.mxu0 %v1196_v3  ;;  %v1204_v9 = vpack.c.bf16 %v17_v7, %v16_v6  ;;  %v58_v10 = vld [vmem:[%s1619_s0 + $0x8] sm:$0xff]  ;;  %v59_v11 = vld [vmem:[%s1619_s0 + $0x10] sm:$0xff]  ;;  %vm163_vm1 = vcmask 261120   ;;  %v1337_v46 = vmov 0.0|0.0  }
   0x6   :  { %1201 = vmatprep.subr.bf16.mxu0 %v1200_v5  ;;  %v60_v12 = vld [vmem:[%s1619_s0 + $0x18] sm:$0xff]  ;;  %v1008_v13 = vld [vmem:[%s1620_s1 + $0x128] ss:$0 sm:$0xff]  ;;  %1208 = vmatprep.subr.bf16.mxu1 %v1337_v46  ;;  %vm1338_vm2 = vmmov 0   ;;  %v1339_v47 = vmov 0.0   ;;  %v24_v49 = vld [vmem:[%s1620_s1 + $0x60] sm:$0xff] }
   0x7   :  { %1108 = vmatprep.mubr.msk.f32.mxu1 %vm1338_vm2, %v1339_v47  ;;  %v23_v48 = vld [vmem:[%s1620_s1 + $0x58] sm:$0xff]  ;;  %v25_v51 = vld [vmem:[%s1620_s1 + $0x68] sm:$0xff]  ;;  %v26_v52 = vld [vmem:[%s1620_s1 + $0x70] sm:$0xff]  ;;  %s1340_s25 = smov 64   ;;  %s1341_s16 = smov 32   ;;  %vm486_vm3 = vcmask 1041408  }
   0x8   :  { %v1221_v50 = vpack.c.bf16 %v24_v49, %v23_v48  ;;  %v1224_v53 = vpack.c.bf16 %v26_v52, %v25_v51  ;;  %v1013_v4 = vld [vmem:[%s1620_s1 + $0x129] ss:$0 sm:$0xff]  ;;  %v1022_v49 = vld [vmem:[%s1620_s1 + $0x12e] ss:$0 sm:$0xff]  ;;  %v48_v51 = vld [vmem:[%s1620_s1 + $0x120] sm:$0xff]  ;;  %vm488_vm4 = vcmask 523264  }
   0x9   :  { %1203 = vmatpush3.bf16.msra.mxu0 %v1200_v5  ;;  %v1018_v52 = vld [vmem:[%s1620_s1 + $0x12d] ss:$0 sm:$0xff]  ;;  %s1342_s28 = smov 16   ;;  %s1343_s29 = smov 96   ;;  %vm632_vm6 = vcmask 130048   ;;  %vm588_vm7 = vcmask 125954  }
   0xa   :  { %1205 = vmatprep.subr.bf16.mxu0 %v1204_v9  ;;  %s1344_s30 = smov 112   ;;  %vm806_vm8 = vcmask 1040384   ;;  %vm992_vm9 = vcmask 58368  }
   0xd   :  { %1207 = vmatpush3.bf16.msra.mxu0 %v1204_v9  ;;  %v1014_v9 = vld [vmem:[%s1620_s1 + $0x12a] ss:$0 sm:$0xff] }
   0xe   :  { %1220 = vmatprep.subr.bf16.mxu0 %v1337_v46 }
  0x10   :  { %1095 = vmatmul.mubr.msk.f32.vlgmr.msra.gmra.mrb[0].mxu0 %vm65_vm0, %v58_v10 }
  0x11   :  { %1097 = vmatprep.mubr.msk.f32.mxu0 %vm65_vm0, %v59_v11  ;;  %1222 = vmatpush3.bf16.msra.mxu0 %v1221_v50  ;;  %v47_v50 = vld [vmem:[%s1620_s1 + $0x118] sm:$0xff] }
  0x12   :  { %1223 = vmatprep.subr.bf16.mxu0 %v1337_v46 }
  0x14   :  { %1098 = vmatmul.mubr.msk.f32.gmra.mrb[2].mxu0 %vm65_vm0, %v60_v12 }
  0x15   :  { %1130 = vmatprep.mubr.msk.f32.mxu0 %vm1338_vm2, %v1339_v47  ;;  %1225 = vmatpush3.bf16.msra.mxu0 %v1224_v53 }
  0x16   :  { %1238 = vmatprep.subr.bf16.mxu0 %v1337_v46 }
  0xe3   :  { %v1096_v14 = vpop.f32.mrb[0].mxu0 }
  0xe4   :  { %v144_v15 = vpop.f32.mrb[1].mxu0  ;;  %v150_v17 = vadd.f32 %v1096_v14, %v1008_v13 }
  0xe5   :  { %v145_v16 = vadd.f32 %v1008_v13, %v144_v15 }
  0xe6   :  { %v167_v24 = vsel %vm163_vm1, %v150_v17, 0.0 }
  0xe7   :  { %v1099_v18 = vpop.f32.mrb[2].mxu0  ;;  %v164_v19 = vsel %vm163_vm1, %v145_v16, 0.0 }
  0xe8   :  { %v154_v20 = vpop.f32.mrb[3].mxu0  ;;  %165 = vadd.xlane.f32.xlu0 %v164_v19  ;;  %v160_v22 = vadd.f32 %v1099_v18, %v1008_v13 }
  0xe9   :  { %v155_v21 = vadd.f32 %v1008_v13, %v154_v20 }
  0xea   :  { %v173_v25 = vsel %vm163_vm1, %v160_v22, 0.0 }
  0xeb   :  { %v170_v23 = vsel %vm163_vm1, %v155_v21, 0.0 }
  0xec   :  { %171 = vadd.xlane.f32.xlu1 %v170_v23  ;;  %168 = vadd.xlane.f32.xlu0 %v167_v24  ;;  %v18_v24 = vld [vmem:[%s1620_s1 + $0x30] sm:$0x3] }
  0xf0   :  { %174 = vadd.xlane.f32.xlu1 %v173_v25 }
 0x175   :  { %v166_v26 = vpop.xlane.xlu0 %165 }
 0x176   :  { %v177_v27 = vmul.f32 0.03125, %v166_v26  ;;  %v21_v26 = vld [vmem:[%s1620_s1 + $0x48] sm:$0xff] }
 0x178   :  { %v181_v28 = vsub.f32 %v145_v16, %v177_v27  ;;  %v22_v27 = vld [vmem:[%s1620_s1 + $0x50] sm:$0xff] }
 0x179   :  { %v172_v29 = vpop.xlane.xlu1 %171  ;;  %v169_v30 = vpop.xlane.xlu0 %168 }
 0x17a   :  { %v179_v31 = vmul.f32 0.03125, %v172_v29  ;;  %v178_v32 = vmul.f32 0.03125, %v169_v30  ;;  %v185_v33 = vmul.f32 %v181_v28, %v181_v28 }
 0x17c   :  { %v183_v34 = vsub.f32 %v155_v21, %v179_v31  ;;  %v182_v35 = vsub.f32 %v150_v17, %v178_v32  ;;  %v189_v36 = vsel %vm163_vm1, %v185_v33, 0.0  ;;  %v19_v21 = vld [vmem:[%s1620_s1 + $0x38] sm:$0xff] }
 0x17d   :  { %v175_v37 = vpop.xlane.xlu1 %174  ;;  %190 = vadd.xlane.f32.xlu0 %v189_v36  ;;  %v28_v36 = vld [vmem:[%s1620_s1 + $0x80] sm:$0xff] }
 0x17e   :  { %v180_v38 = vmul.f32 0.03125, %v175_v37  ;;  %v187_v39 = vmul.f32 %v183_v34, %v183_v34  ;;  %v186_v40 = vmul.f32 %v182_v35, %v182_v35 }
 0x180   :  { %v184_v41 = vsub.f32 %v160_v22, %v180_v38  ;;  %v195_v42 = vsel %vm163_vm1, %v187_v39, 0.0  ;;  %v192_v43 = vsel %vm163_vm1, %v186_v40, 0.0  ;;  %v20_v22 = vld [vmem:[%s1620_s1 + $0x40] sm:$0xff]  ;;  %v29_v38 = vld [vmem:[%s1620_s1 + $0x88] sm:$0xff]  ;;  %v30_v39 = vld [vmem:[%s1620_s1 + $0x90] sm:$0xff] }
 0x181   :  { %196 = vadd.xlane.f32.xlu0 %v195_v42  ;;  %193 = vadd.xlane.f32.xlu1 %v192_v43  ;;  %v1215_v25 = vpack.c.bf16 %v20_v22, %v19_v21  ;;  %v1230_v40 = vpack.c.bf16 %v30_v39, %v29_v38  ;;  %v32_v42 = vld [vmem:[%s1620_s1 + $0xa0] sm:$0xff]  ;;  %v602_v21 = vlaneseq }
 0x182   :  { %v188_v44 = vmul.f32 %v184_v41, %v184_v41 }
 0x183   :  { %v603_v22 = vshrl.u32 %v602_v21, 7  ;;  %v40_v21 = vld [vmem:[%s1620_s1 + $0xe0] sm:$0xff] }
 0x184   :  { %v198_v45 = vsel %vm163_vm1, %v188_v44, 0.0  ;;  %v33_v44 = vld [vmem:[%s1620_s1 + $0xa8] sm:$0xff] }
 0x185   :  { %199 = vadd.xlane.f32.xlu1 %v198_v45  ;;  %v34_v45 = vld [vmem:[%s1620_s1 + $0xb0] sm:$0xff] }
 0x186   :  { %v1236_v48 = vpack.c.bf16 %v34_v45, %v33_v44 }
 0x196   :  { %567 = vrot.lane.b32.xlu1 %v1022_v49, %s1341_s16 }
 0x19a   :  { %608 = vrot.lane.b32.xlu1 %v47_v50, %s1341_s16 }
 0x19e   :  { %610 = vrot.lane.b32.xlu1 %v48_v51, %s1341_s16 }
 0x20a   :  { %v191_v54 = vpop.xlane.xlu0 %190 }
 0x20b   :  { %v201_v55 = vmul.f32 0.03125, %v191_v54  ;;  %v1019_v54 = vld [vmem:[%s1620_s1 + $0x12b] ss:$0 sm:$0xff] }
 0x20d   :  { %v205_v56 = vadd.f32 1e-06, %v201_v55 }
 0x20e   :  { %v194_v57 = vpop.xlane.xlu1 %193  ;;  %v197_v58 = vpop.xlane.xlu0 %196 }
 0x20f   :  { %1281 = vrsqrt.f32 %v205_v56  ;;  %v202_v59 = vmul.f32 0.03125, %v194_v57  ;;  %v203_v60 = vmul.f32 0.03125, %v197_v58  ;;  %v1020_v56 = vld [vmem:[%s1620_s1 + $0x12c] ss:$0 sm:$0xff] }
 0x211   :  { %v206_v61 = vadd.f32 1e-06, %v202_v59  ;;  %v207_v62 = vadd.f32 1e-06, %v203_v60 }
 0x212   :  { %v200_v63 = vpop.xlane.xlu1 %199 }
 0x213   :  { %1283 = vrsqrt.f32 %v206_v61  ;;  %v204_v0 = vmul.f32 0.03125, %v200_v63 }
 0x214   :  { %1285 = vrsqrt.f32 %v207_v62 }
 0x215   :  { %v208_v1 = vadd.f32 1e-06, %v204_v0 }
 0x217   :  { %1287 = vrsqrt.f32 %v208_v1 }
 0x219   :  { %v1282_v2 = vpop.eup %1281 }
 0x21a   :  { %v213_v3 = vmul.f32 %v1282_v2, %v181_v28  ;;  %v1218_v28 = vpack.c.bf16 %v22_v27, %v21_v26  ;;  %v707_v26 = vsub.s32 3, %v603_v22 }
 0x21c   :  { %v221_v8 = vmul.f32 %v1013_v4, %v213_v3 }
 0x21d   :  { %v1284_v5 = vpop.eup %1283 }
 0x21e   :  { %v1286_v6 = vpop.eup %1285  ;;  %v214_v7 = vmul.f32 %v1284_v5, %v182_v35  ;;  %v229_v13 = vadd.f32 %v1014_v9, %v221_v8  ;;  %v27_v35 = vld [vmem:[%s1620_s1 + $0x78] sm:$0xff] }
 0x21f   :  { %v215_v10 = vmul.f32 %v1286_v6, %v183_v34  ;;  %v1227_v37 = vpack.c.bf16 %v28_v36, %v27_v35 }
 0x220   :  { %v222_v11 = vmul.f32 %v1013_v4, %v214_v7 }
 0x221   :  { %v1288_v12 = vpop.eup %1287  ;;  %v223_v16 = vmul.f32 %v1013_v4, %v215_v10 }
 0x222   :  { %v230_v14 = vadd.f32 %v1014_v9, %v222_v11  ;;  %v216_v15 = vmul.f32 %v1288_v12, %v184_v41  ;;  %v31_v41 = vld [vmem:[%s1620_s1 + $0x98] sm:$0xff]  ;;  %v568_v12 = vpop.permute.xlu1 %567 }
 0x223   :  { %v231_v19 = vadd.f32 %v1014_v9, %v223_v16  ;;  %v1233_v43 = vpack.c.bf16 %v32_v42, %v31_v41 }
 0x224   :  { %v1209_v17 = vpack.c.bf16 %v230_v14, %v229_v13  ;;  %v224_v18 = vmul.f32 %v1013_v4, %v216_v15 }
 0x226   :  { %1210 = vmatpush3.bf16.msra.mxu1 %v1209_v17  ;;  %v232_v20 = vadd.f32 %v1014_v9, %v224_v18 }
 0x227   :  { %1211 = vmatprep.subr.bf16.mxu1 %v1337_v46 }
 0x228   :  { %v1212_v23 = vpack.c.bf16 %v232_v20, %v231_v19 }
 0x22a   :  { %1213 = vmatpush3.bf16.msra.mxu1 %v1212_v23  ;;  %v609_v23 = vpop.permute.xlu1 %608 }
 0x22b   :  { %1214 = vmatprep.subr.bf16.mxu1 %v1337_v46 }
 0x22d   :  { %1109 = vmatmul.mubr.msk.f32.vlgmr.msra.gmra.mrb[0].mxu1 %vm163_vm1, %v18_v24 }
 0x22e   :  { %1216 = vmatpush3.bf16.msra.mxu1 %v1215_v25  ;;  %1119 = vmatprep.mubr.msk.f32.mxu1 %vm1338_vm2, %v1339_v47  ;;  %v604_v25 = vsub.s32 2, %v603_v22 }
 0x22f   :  { %1217 = vmatprep.subr.bf16.mxu1 %v1337_v46 }
 0x232   :  { %1219 = vmatpush3.bf16.msra.mxu1 %v1218_v28 }
 0x233   :  { %1226 = vmatprep.subr.bf16.mxu1 %v1337_v46 }
 0x300   :  { %v302_v29 = vpop.f32.mrb[0].mxu1 }
 0x301   :  { %v1110_v30 = vpop.f32.mrb[1].mxu1  ;;  %1120 = vmatmul.mubr.msk.f32.vlgmr.msra.gmra.mrb[2].mxu1 %vm163_vm1, %v302_v29  ;;  %1131 = vmatmul.mubr.msk.f32.vlgmr.msra.gmra.mrb[4].mxu0 %vm163_vm1, %v302_v29  ;;  %v611_v29 = vpop.permute.xlu1 %610 }
 0x302   :  { %1149 = vmatprep.mubr.msk.f32.mxu1 %vm1338_vm2, %v1339_v47  ;;  %1156 = vmatprep.mubr.msk.f32.mxu0 %vm1338_vm2, %v1339_v47 }
 0x303   :  { %1228 = vmatpush3.bf16.msra.mxu1 %v1227_v37 }
 0x304   :  { %1229 = vmatprep.subr.bf16.mxu1 %v1337_v46 }
 0x307   :  { %1231 = vmatpush3.bf16.msra.mxu1 %v1230_v40 }
 0x308   :  { %1232 = vmatprep.subr.bf16.mxu1 %v1337_v46 }
 0x30b   :  { %1234 = vmatpush3.bf16.msra.mxu1 %v1233_v43 }
 0x30c   :  { %1235 = vmatprep.subr.bf16.mxu1 %v1337_v46 }
 0x30f   :  { %1237 = vmatpush3.bf16.msra.mxu1 %v1236_v48 }
 0x310   :  { %1256 = vmatprep.subr.bf16.mxu1 %v1337_v46 }
 0x3d4   :  { %v375_v31 = vpop.f32.mrb[2].mxu1  ;;  %v1460_v32 = vpop.f32.mrb[4].mxu0 }
 0x3d5   :  { %v1132_v33 = vpop.f32.mrb[5].mxu0  ;;  %472 = vrot.lane.b32.xlu0 %v375_v31, %s1340_s25  ;;  %v1121_v34 = vpop.f32.mrb[3].mxu1  ;;  %v453_v53 = vmul.f32 %v1018_v52, %v375_v31  ;;  %v469_v58 = vmul.f32 %v1020_v56, %v375_v31 }
 0x3d7   :  { %v458_v55 = vadd.f32 %v1019_v54, %v453_v53  ;;  %v470_v61 = vadd.f32 %v1019_v54, %v469_v58 }
 0x3d9   :  { %v459_v57 = vsub.f32 0.0, %v458_v55 }
 0x3db   :  { %v460_v60 = vmul.f32 1.442695, %v459_v57 }
 0x3dd   :  { %1289 = vpow2.f32 %v460_v60 }
 0x3e7   :  { %v1290_v2 = vpop.eup %1289 }
 0x3e8   :  { %v462_v3 = vadd.f32 1.0, %v1290_v2 }
 0x447   :  { %v473_v59 = vpop.permute.xlu0 %472 }
 0x448   :  { %v475_v62 = vmul.f32 %v1018_v52, %v473_v59 }
 0x44a   :  { %v476_v63 = vadd.f32 %v475_v62, %v470_v61 }
 0x44c   :  { %v477_v0 = vsub.f32 0.0, %v476_v63 }
 0x44e   :  { %v478_v1 = vmul.f32 1.442695, %v477_v0 }
 0x450   :  { %1291 = vpow2.f32 %v478_v1 }
 0x451   :  { %1293 = vrcp.f32 %v462_v3  ;;  %v827_v3 = vsub.f32 0.0, %v1460_v32 }
 0x45a   :  { %v1292_v4 = vpop.eup %1291 }
 0x45b   :  { %v480_v5 = vadd.f32 1.0, %v1292_v4  ;;  %v1294_v6 = vpop.eup %1293  ;;  %v828_v4 = vmul.f32 1.442695, %v827_v3 }
 0x45c   :  { %v1514_v9 = vmul.f32 %v1294_v6, %v458_v55 }
 0x45d   :  { %1295 = vrcp.f32 %v480_v5 }
 0x467   :  { %v1296_v7 = vpop.eup %1295 }
 0x468   :  { %v1512_v8 = vmul.f32 %v1296_v7, %v476_v63 }
 0x46a   :  { %v484_v10 = vrot.slane %v1512_v8, 6 }
 0x46c   :  { %v487_v11 = vsel %vm486_vm3, %v1514_v9, %v484_v10 }
 0x46d   :  { %1150 = vmatmul.mubr.msk.f32.vlgmr.msra.gmra.mrb[4].mxu1 %vm488_vm4, %v487_v11 }
 0x46e   :  { %1193 = vmatprep.mubr.msk.f32.mxu1 %vm1338_vm2, %v1339_v47 }
 0x540   :  { %v1523_v13 = vpop.f32.mrb[4].mxu1 }
 0x541   :  { %v570_v14 = vadd.f32 %v568_v12, %v1523_v13  ;;  %v1151_v15 = vpop.f32.mrb[5].mxu1  ;;  %v597_v16 = vrot.slane %v1523_v13, 6 }
 0x543   :  { %v571_v17 = vmin.f32 %v570_v14, 20.0  ;;  %598 = vrot.lane.b32.xlu0 %v597_v16, %s1342_s28  ;;  %vm572_vm5 = vcmp.gt.f32.partialorder %v570_v14, 20.0  ;;  %v38_v16 = vld [vmem:[%s1620_s1 + $0xd0] sm:$0xff] }
 0x545   :  { %v573_v18 = vmul.f32 1.442695, %v571_v17 }
 0x547   :  { %1297 = vpow2.f32 %v573_v18  ;;  %v1025_v18 = vld [vmem:[%s1620_s1 + $0x12f] ss:$0 sm:$0xff] }
 0x548   :  { %v821_v22 = vmul.f32 %v1025_v18, %v1512_v8 }
 0x551   :  { %v1298_v19 = vpop.eup %1297 }
 0x552   :  { %v575_v20 = vadd.f32 1.0, %v1298_v19 }
 0x554   :  { %1299 = vlog2.f32 %v575_v20  ;;  %v39_v20 = vld [vmem:[%s1620_s1 + $0xd8] sm:$0xff] }
 0x55e   :  { %v1300_v24 = vpop.eup %1299 }
 0x55f   :  { %v577_v27 = vmul.f32 0.6931472, %v1300_v24  ;;  %v1251_v24 = vpack.c.bf16 %v40_v21, %v39_v20 }
 0x561   :  { %v1528_v28 = vsel %vm572_vm5, %v570_v14, %v577_v27  ;;  %v37_v14 = vld [vmem:[%s1620_s1 + $0xc8] sm:$0xff] }
 0x562   :  { %v605_v30 = vrot.slane %v1528_v28, %v604_v25  ;;  %v708_v31 = vrot.slane %v1528_v28, %v707_v26  ;;  %v1248_v19 = vpack.c.bf16 %v38_v16, %v37_v14  ;;  %v41_v25 = vld [vmem:[%s1620_s1 + $0xe8] sm:$0xff]  ;;  %v42_v26 = vld [vmem:[%s1620_s1 + $0xf0] sm:$0xff] }
 0x563   :  { %v1254_v8 = vpack.c.bf16 %v42_v26, %v41_v25 }
 0x564   :  { %v614_v33 = vmul.f32 %v609_v23, %v605_v30  ;;  %v709_v34 = vmul.f32 %v708_v31, %v609_v23  ;;  %v615_v35 = vmul.f32 %v611_v29, %v605_v30  ;;  %v710_v36 = vmul.f32 %v708_v31, %v611_v29 }
 0x566   :  { %v616_v37 = vmul.f32 1.442695, %v614_v33  ;;  %v711_v38 = vmul.f32 1.442695, %v709_v34  ;;  %v618_v39 = vmul.f32 1.442695, %v615_v35 }
 0x567   :  { %v713_v40 = vmul.f32 1.442695, %v710_v36  ;;  %v43_v35 = vld [vmem:[%s1620_s1 + $0xf8] sm:$0xff] }
 0x568   :  { %1301 = vpow2.f32 %v616_v37 }
 0x569   :  { %1303 = vpow2.f32 %v711_v38 }
 0x56a   :  { %1305 = vpow2.f32 %v618_v39 }
 0x56b   :  { %1307 = vpow2.f32 %v713_v40 }
 0x56c   :  { %1309 = vpow2.f32 %v828_v4 }
 0x572   :  { %v1302_v41 = vpop.eup %1301 }
 0x573   :  { %v1304_v42 = vpop.eup %1303 }
 0x574   :  { %v1306_v43 = vpop.eup %1305 }
 0x575   :  { %v1308_v44 = vpop.eup %1307  ;;  %v1271_v45 = vpack.i.bf16 %v1306_v43, %v1302_v41 }
 0x576   :  { %v1276_v48 = vpack.i.bf16 %v1308_v44, %v1304_v42  ;;  %v1310_v5 = vpop.eup %1309 }
 0x577   :  { %1272 = vrot.lane.b32.xlu1 %v1271_v45, %s1343_s29  ;;  %v830_v6 = vadd.f32 1.0, %v1310_v5 }
 0x578   :  { %1277 = vrot.lane.b32.xlu0 %v1276_v48, %s1343_s29 }
 0x579   :  { %1311 = vrcp.f32 %v830_v6 }
 0x583   :  { %v1312_v23 = vpop.eup %1311 }
 0x584   :  { %v832_v27 = vmul.f32 %v1312_v23, %v1460_v32  ;;  %v44_v32 = vld [vmem:[%s1620_s1 + $0x100] sm:$0xff] }
 0x585   :  { %v1257_v37 = vpack.c.bf16 %v44_v32, %v43_v35 }
 0x587   :  { %1258 = vmatpush3.bf16.msra.mxu1 %v1257_v37 }
 0x588   :  { %1259 = vmatprep.subr.bf16.mxu1 %v1337_v46 }
 0x5b5   :  { %v599_v49 = vpop.permute.xlu0 %598 }
 0x5b6   :  { %v601_v50 = vmul.f32 %v599_v49, %v1523_v13 }
 0x5b8   :  { %v621_v51 = vrot.slane %v601_v50, 2  ;;  %v715_v52 = vrot.slane %v601_v50, 3  ;;  %v913_v50 = vld [vmem:[%s1619_s0 + $0x20] sm:$0x3] }
 0x5ba   :  { %716 = vrot.lane.b32.xlu0 %v715_v52, %s1344_s30  ;;  %622 = vrot.lane.b32.xlu1 %v621_v51, %s1344_s30 }
 0x5be   :  { %580 = vrot.lane.b32.xlu1 %v1523_v13, %s1342_s28 }
 0x5e9   :  { %v1273_v53 = vpop.permute.xlu1 %1272 }
 0x5ea   :  { %v1275_v54 = vunpack.i.h.bf16 %v1273_v53  ;;  %v1274_v55 = vunpack.i.l.bf16 %v1273_v53  ;;  %v1278_v57 = vpop.permute.xlu0 %1277 }
 0x5eb   :  { %v1280_v58 = vunpack.i.h.bf16 %v1278_v57  ;;  %v1279_v59 = vunpack.i.l.bf16 %v1278_v57 }
 0x5ec   :  { %v1239_v56 = vpack.c.bf16 %v1275_v54, %v1274_v55 }
 0x5ed   :  { %v1242_v60 = vpack.c.bf16 %v1280_v58, %v1279_v59 }
 0x5ee   :  { %1240 = vmatpush3.bf16.msra.mxu0 %v1239_v56 }
 0x5ef   :  { %1241 = vmatprep.subr.bf16.mxu0 %v1337_v46 }
 0x62c   :  { %v623_v61 = vpop.permute.xlu1 %622  ;;  %v717_v62 = vpop.permute.xlu0 %716 }
 0x62d   :  { %1157 = vmatmul.mubr.msk.f32.vlgmr.msra.gmra.mrb[6].mxu0 %vm632_vm6, %v623_v61 }
 0x62e   :  { %1243 = vmatpush3.bf16.msra.mxu0 %v1242_v60  ;;  %1163 = vmatprep.mubr.msk.f32.mxu0 %vm1338_vm2, %v1339_v47 }
 0x62f   :  { %1244 = vmatprep.subr.bf16.mxu0 %v1337_v46 }
 0x630   :  { %v581_v63 = vpop.permute.xlu1 %580 }
 0x631   :  { %v583_v0 = vmul.f32 %v581_v63, %v1523_v13  ;;  %1164 = vmatmul.mubr.msk.f32.vlgmr.msra.gmra.mrb[8].mxu0 %vm632_vm6, %v717_v62  ;;  %v36_v13 = vld [vmem:[%s1620_s1 + $0xc0] sm:$0xff] }
 0x632   :  { %1182 = vmatprep.mubr.msk.f32.mxu0 %vm1338_vm2, %v1339_v47 }
 0x633   :  { %585 = vrot.lane.b32.xlu0 %v583_v0, %s1344_s30 }
 0x637   :  { %593 = vrot.lane.b32.xlu0 %v484_v10, %s1341_s16 }
 0x63b   :  { %799 = vrot.lane.b32.xlu0 %v1514_v9, %s1341_s16  ;;  %v35_v9 = vld [vmem:[%s1620_s1 + $0xb8] sm:$0xff] }
 0x63c   :  { %v1245_v15 = vpack.c.bf16 %v36_v13, %v35_v9 }
 0x63e   :  { %1246 = vmatpush3.bf16.msra.mxu0 %v1245_v15 }
 0x63f   :  { %1247 = vmatprep.subr.bf16.mxu0 %v1337_v46 }
 0x642   :  { %1249 = vmatpush3.bf16.msra.mxu0 %v1248_v19 }
 0x643   :  { %1250 = vmatprep.subr.bf16.mxu0 %v1337_v46 }
 0x646   :  { %1252 = vmatpush3.bf16.msra.mxu0 %v1251_v24 }
 0x647   :  { %1253 = vmatprep.subr.bf16.mxu0 %v1337_v46  ;;  %v46_v46 = vld [vmem:[%s1620_s1 + $0x110] sm:$0xff] }
 0x64a   :  { %1255 = vmatpush3.bf16.msra.mxu0 %v1254_v8 }
 0x6a5   :  { %v586_v1 = vpop.permute.xlu0 %585 }
 0x6a6   :  { %v589_v2 = vsel %vm588_vm7, %v586_v1, 0.0 }
 0x6a7   :  { %590 = vadd.xlane.f32.xlu1 %v589_v2 }
 0x6a9   :  { %v594_v29 = vpop.permute.xlu0 %593 }
 0x6ad   :  { %v800_v33 = vpop.permute.xlu0 %799 }
 0x6ae   :  { %v802_v36 = vmul.f32 %v800_v33, %v1528_v28 }
 0x700   :  { %v701_v7 = vpop.f32.mrb[6].mxu0 }
 0x701   :  { %v1158_v47 = vpop.f32.mrb[7].mxu0 }
 0x704   :  { %v794_v11 = vpop.f32.mrb[8].mxu0 }
 0x705   :  { %v804_v12 = vrot.slane %v794_v11, 7  ;;  %v1165_v10 = vpop.f32.mrb[9].mxu0 }
 0x707   :  { %v807_v17 = vsel %vm806_vm8, %v701_v7, %v804_v12 }
 0x708   :  { %809 = vrot.lane.b32.xlu0 %v807_v17, %s1341_s16 }
 0x70c   :  { %823 = vrot.lane.b32.xlu0 %v821_v22, %s1341_s16 }
 0x710   :  { %834 = vrot.lane.b32.xlu0 %v832_v27, %s1341_s16 }
 0x734   :  { %v591_v30 = vpop.xlane.xlu1 %590 }
 0x735   :  { %v592_v31 = vmul.f32 %v591_v30, %v1528_v28  ;;  %v45_v28 = vld [vmem:[%s1620_s1 + $0x108] sm:$0xff] }
 0x736   :  { %v1260_v49 = vpack.c.bf16 %v46_v46, %v45_v28 }
 0x737   :  { %v596_v34 = vmul.f32 %v594_v29, %v592_v31 }
 0x738   :  { %1261 = vmatpush3.bf16.msra.mxu1 %v1260_v49 }
 0x739   :  { %v814_v39 = vrot.slane %v596_v34, 2 }
 0x77a   :  { %v810_v38 = vpop.permute.xlu0 %809 }
 0x77b   :  { %v812_v40 = vmul.f32 %v810_v38, %v802_v36 }
 0x77d   :  { %v816_v41 = vadd.f32 %v814_v39, %v812_v40 }
 0x77e   :  { %v824_v42 = vpop.permute.xlu0 %823 }
 0x77f   :  { %v826_v43 = vadd.f32 %v824_v42, %v816_v41 }
 0x782   :  { %v835_v44 = vpop.permute.xlu0 %834 }
 0x783   :  { %v837_v45 = vmul.f32 %v835_v44, %v826_v43 }
 0x785   :  { %839 = vrot.lane.b32.xlu0 %v837_v45, %s1343_s29 }
 0x789   :  { %916 = vrot.lane.b32.xlu0 %v1025_v18, %s1340_s25  ;;  %s1345_s25 = smov [#allocation2]  }
 0x78a   :  { %s1000_s29 = sshll.u32 %s1345_s25, 4  ;;  %s1001_s29 = int_to_ptr.vmem [resolvable:$true] %s1000_s29 }
 0x78b   :  { %s1313_s1 = scalar_lea.vmem %s1001_s29, 32  ;;  %p1318_p1 = scmp.lt.s32.totalorder %s1001_s29, %s1001_s29 }
 0x78c   :  { %p1314_p0 = scmp.ne.s32.totalorder %s1001_s29, %s1313_s1  ;;  %p1319_p2 = scmp.lt.s32.totalorder %s1313_s1, %s1313_s1 }
 0x78e   :  { %p1320_p3 = por %p1319_p2, %p1318_p1 }
 0x790   :  { %p1321_p4 = pnand %p1320_p3, %p1314_p0 }
 0x7f7   :  { %v840_v48 = vpop.permute.xlu0 %839 }
 0x7f8   :  { %1183 = vmatmul.mubr.msk.f32.vlgmr.msra.gmra.mrb[10].mxu0 %vm488_vm4, %v840_v48 }
 0x7fb   :  { %v917_v54 = vpop.permute.xlu0 %916 }
 0x8cb   :  { %v909_v51 = vpop.f32.mrb[10].mxu0 }
 0x8cc   :  { %v914_v52 = vmul.f32 %v913_v50, %v909_v51  ;;  %v1184_v53 = vpop.f32.mrb[11].mxu0 }
 0x8ce   :  { %1194 = vmatmul.mubr.msk.f32.vlgmr.msra.gmra.mrb[6].mxu1 %vm163_vm1, %v914_v52 }
 0x9a1   :  { %v988_v55 = vpop.f32.mrb[6].mxu1 }
 0x9a2   :  { %v989_v56 = vadd.f32 %v988_v55, %v917_v54  ;;  %v1195_v57 = vpop.f32.mrb[7].mxu1 }
 0x9a4   :  { %993 = vst.msk [vmem:[#allocation2] sm:$0x3] %vm992_vm9, %v989_v56 }
 0x9a5   :  { %1324 = shalt.err (!%p1321_p4)
}
 0x9a6   :  { %s1325_s6 = scalar_lea.hbm %s1621_s2, 32 }
 0x9a7   :  { %p1326_p5 = scmp.ne.s32.totalorder %s1621_s2, %s1325_s6  ;;  %p1329_p6 = scmp.lt.u32.totalorder %s1325_s6, %s1621_s2 }
 0x9a9   :  { %p1331_p7 = pnand %p1329_p6, %p1326_p5 }
 0x9ab   :  { %1334 = shalt.err (!%p1331_p7)
}
 0x9ac   :  { %1003 = dma.vmem_to_hbm [thread:$0]  %s1001_s29, 32, %s1621_s2, [#allocation3]  }
 0x9ad   :  { %1335 = dma.done.wait [#allocation3], 32  }
 0x9ae   :  { %1336 = vsyncadd [#allocation3], 4294967264 }
 0x9af   :  { %1007 = vsyncpa [#allocation3], 1 }

</bundles_post_ra>
